<compile_context>
chip_gen: v5e
topology: v5e:2x2
jax: 0.10.0
libtpu: 0.0.40
codegen_flags: <defaults>
</compile_context>

<pallas_src>
import functools

import jax
import jax.numpy as jnp
import numpy as np
from jax import lax
from jax.experimental import pallas as pl
from jax.experimental.pallas import tpu as pltpu


# ---------------------------------------------------------------------------
# OnsetACC: fused threshold + exact-match count (Pallas kernel).
# ---------------------------------------------------------------------------
def _onset_acc_kernel(pred_ref, tgt_ref, out_ref, *, n_valid, t_tile):
    """One (1, t_tile) score block + (1, t_tile) target block -> running count.

    out_ref is a (1, 1) accumulator kept VMEM-resident across the whole grid
    (the output BlockSpec returns the same block index for every step), so the
    single grid axis is a reduction axis ('arbitrary').
    """
    i = pl.program_id(0)

    # Lane-validity mask: global position of each lane in this tile.  Handles
    # both the ragged last tile and the tile-larger-than-N case without pad.
    lane = lax.broadcasted_iota(jnp.int32, pred_ref.shape, 1)          # (1, TT)
    valid = (i * t_tile + lane) < n_valid

    # model_output_binary = 1 if y >= 0.5 else 0  ;  exact label match.
    binary = (pred_ref[...] >= jnp.float32(0.5)).astype(jnp.int32)     # (1, TT)
    correct = binary == tgt_ref[...]                                   # (1, TT) bool

    partial = jnp.sum(
        jnp.where(jnp.logical_and(valid, correct),
                  jnp.float32(1.0), jnp.float32(0.0)))

    @pl.when(i == 0)
    def _():
        out_ref[...] = jnp.zeros_like(out_ref)

    out_ref[...] += partial


def onset_accuracy(model_output, targets, *, t_tile=16384):
    """accuracy_score(targets, [1 if y >= 0.5 else 0 for y in model_output]).

    model_output: (N,) float scores; targets: (N,) integer labels (0/1).
    Returns a float32 scalar.
    """
    assert model_output.ndim == 1, "model_output should be 1-dimensional"
    assert targets.ndim == 1, "targets should be 1-dimensional"
    n = model_output.shape[0]

    pred = model_output.reshape(1, n).astype(jnp.float32)
    tgt = targets.reshape(1, n).astype(jnp.int32)

    # 128-aligned lane tile; large by default (amortizes the ~0.35 us per-grid-
    # step overhead).  Tiles may overhang N; the in-kernel lane mask excludes
    # the overhang, so there is no jnp.pad and no masked-store codegen.
    t_tile = max(128, (t_tile // 128) * 128)
    tt = min(t_tile, ((n + 127) // 128) * 128)
    nt = pl.cdiv(n, tt)

    count = pl.pallas_call(
        functools.partial(_onset_acc_kernel, n_valid=n, t_tile=tt),
        out_shape=jax.ShapeDtypeStruct((1, 1), jnp.float32),
        grid_spec=pltpu.PrefetchScalarGridSpec(
            num_scalar_prefetch=0,
            grid=(nt,),
            in_specs=[
                pl.BlockSpec((1, tt), lambda i: (0, i)),   # scores, lane-dense
                pl.BlockSpec((1, tt), lambda i: (0, i)),   # targets, lane-dense
            ],
            out_specs=pl.BlockSpec((1, 1), lambda i: (0, 0)),  # VMEM accumulator
        ),
        compiler_params=pltpu.CompilerParams(
            dimension_semantics=("arbitrary",)),           # reduction axis
    )(pred, tgt)

    return (count[0, 0] / jnp.float32(n)).astype(jnp.float32)


# ---------------------------------------------------------------------------
# OnsetAP: average precision (sklearn semantics), pure-JAX fallback.
# ---------------------------------------------------------------------------
def onset_average_precision(model_output, targets):
    """average_precision_score(targets, model_output) for binary targets."""
    # TODO(synk): global sort/ranking has no clean Pallas equivalent; this path
    # runs as plain JAX (XLA sort + cumsum) rather than a Pallas kernel.
    scores = model_output.astype(jnp.float32)
    y = targets.astype(jnp.float32)
    order = jnp.argsort(-scores)                   # descending by score
    y_s = y[order]
    s_s = scores[order]
    tps = jnp.cumsum(y_s)
    fps = jnp.cumsum(1.0 - y_s)
    # Collapse tied thresholds: only the last index of each tie group counts.
    last = jnp.concatenate([s_s[1:] != s_s[:-1], jnp.ones((1,), dtype=bool)])
    precision = tps / (tps + fps)                  # tps+fps = rank+1 >= 1
    total_pos = tps[-1]
    recall = tps / jnp.maximum(total_pos, 1e-30)
    # Previous kept recall via cumulative max (recall is non-decreasing >= 0).
    r_kept = jnp.where(last, recall, 0.0)
    cmax = lax.cummax(r_kept, axis=0)
    prev = jnp.concatenate([jnp.zeros((1,), recall.dtype), cmax[:-1]])
    ap = jnp.sum(jnp.where(last, (recall - prev) * precision, 0.0))
    return ap.astype(jnp.float32)


# ---------------------------------------------------------------------------
# Module-equivalent wrapper.
# ---------------------------------------------------------------------------
class OnsetLoss:
    """JAX/Pallas port of the PyTorch OnsetLoss module's forward pass."""

    LOSS_TYPES = ("OnsetACC", "OnsetAP")

    def __init__(self, loss_config=None):
        if loss_config is None:
            loss_config = {"type": "OnsetACC", "tolerance": 0.1}
        assert "type" in loss_config, "Loss type not found in loss_config."
        assert "tolerance" in loss_config, "Tolerance not found in loss_config."
        self.loss_type = loss_config["type"]
        if self.loss_type not in self.LOSS_TYPES:
            raise ValueError(
                f"Invalid loss type: {self.loss_type}. "
                f"Should be one of {list(self.LOSS_TYPES)}.")
        self.tolerance = loss_config["tolerance"]
        if not isinstance(self.tolerance, float):
            raise ValueError(
                f"Tolerance should be a float value, but got {self.tolerance}.")

    def __call__(self, model_output, targets):
        if model_output.ndim > 1:
            raise ValueError(
                f"model_output should be 1-dimensional, but got {model_output.shape}.")
        if targets.ndim > 1:
            raise ValueError(
                f"targets should be 1-dimensional, but got {targets.shape}.")
        if self.loss_type == "OnsetACC":
            return onset_accuracy(model_output, targets)
        return onset_average_precision(model_output, targets)


# ---------------------------------------------------------------------------
# Numpy references (mirror sklearn's accuracy_score / average_precision_score).
# ---------------------------------------------------------------------------
def _ref_accuracy(scores, labels):
    binary = (np.asarray(scores) >= 0.5).astype(np.int64)
    return float(np.mean(binary == np.asarray(labels).astype(np.int64)))


def _ref_average_precision(labels, scores):
    labels = np.asarray(labels).astype(np.float64)
    scores = np.asarray(scores).astype(np.float64)
    order = np.argsort(-scores, kind="stable")
    y = labels[order]
    s = scores[order]
    tps = np.cumsum(y)
    fps = np.cumsum(1.0 - y)
    last = np.r_[s[1:] != s[:-1], True]
    tps, fps = tps[last], fps[last]
    precision = tps / (tps + fps)
    recall = tps / tps[-1] if tps[-1] > 0 else np.zeros_like(tps)
    prev = np.r_[0.0, recall[:-1]]
    return float(np.sum((recall - prev) * precision))


if __name__ == "__main__":
    key = jax.random.PRNGKey(0)
    k1, k2, k3, k4, k5, k6 = jax.random.split(key, 6)

    # Small shapes consistent with the module: 1-D vectors of length 8.
    n = 8
    scores = jax.random.uniform(k1, (n,), dtype=jnp.float32)
    labels = jax.random.randint(k2, (n,), 0, 2, dtype=jnp.int32)

    criterion = OnsetLoss({"type": "OnsetACC", "tolerance": 0.1})
    loss = jax.block_until_ready(criterion(scores, labels))
    ref = _ref_accuracy(scores, labels)
    assert np.allclose(np.asarray(loss), ref, rtol=1e-6, atol=1e-6), (float(loss), ref)

    # Multi-tile + ragged tail: exercises the in-kernel lane-validity mask and
    # the VMEM-resident accumulator across several 16K-lane tiles.
    n2 = 33000
    scores2 = jax.random.uniform(k3, (n2,), dtype=jnp.float32)
    labels2 = jax.random.randint(k4, (n2,), 0, 2, dtype=jnp.int32)
    loss2 = jax.block_until_ready(onset_accuracy(scores2, labels2))
    ref2 = _ref_accuracy(scores2, labels2)
    assert np.allclose(np.asarray(loss2), ref2, rtol=1e-6, atol=1e-6), (float(loss2), ref2)

    # OnsetAP path (pure-JAX fallback; no Pallas equivalent for the sort).
    n3 = 1000
    scores3 = jax.random.uniform(k5, (n3,), dtype=jnp.float32)
    labels3 = jax.random.randint(k6, (n3,), 0, 2, dtype=jnp.int32)
    labels3 = labels3.at[0].set(1).at[1].set(0)   # guarantee both classes present
    criterion_ap = OnsetLoss({"type": "OnsetAP", "tolerance": 0.1})
    ap = jax.block_until_ready(criterion_ap(scores3, labels3))
    ref_ap = _ref_average_precision(labels3, scores3)
    assert np.allclose(np.asarray(ap), ref_ap, rtol=1e-4, atol=1e-5), (float(ap), ref_ap)

    print("KERNEL_OK")
</pallas_src>

<mosaic_0001>
module attributes {stable_mosaic.version = 11 : i64} {
  func.func @_onset_acc_kernel(%arg0: i32, %arg1: memref<1x128xf32, #tpu.memory_space<vmem>>, %arg2: memref<1x128xi32, #tpu.memory_space<vmem>>, %arg3: memref<1x1xf32, #tpu.memory_space<vmem>>) attributes {dimension_semantics = [#tpu.dimension_semantics<arbitrary>], iteration_bounds = array<i64: 1>, scalar_prefetch = 0 : i64, scratch_operands = 0 : i64, tpu.core_type = #tpu.core_type<tc>, window_params = [{transform_indices = @transform_0, window_bounds = array<i64: 1, 128>}, {transform_indices = @transform_1, window_bounds = array<i64: 1, 128>}, {pipeline_mode = #tpu.pipeline_mode<synchronous>, transform_indices = @transform_2, window_bounds = array<i64: 1, 1>}]} {
    %0 = tpu.iota {dimensions = array<i32: 1>} : vector<1x128xi32>
    %c128_i32 = arith.constant 128 : i32
    %1 = arith.muli %arg0, %c128_i32 : i32
    %2 = vector.broadcast %1 : i32 to vector<1x128xi32>
    %3 = arith.addi %2, %0 : vector<1x128xi32>
    %c8_i32 = arith.constant 8 : i32
    %4 = vector.broadcast %c8_i32 : i32 to vector<1x128xi32>
    %5 = arith.cmpi slt, %3, %4 : vector<1x128xi32>
    %c0 = arith.constant 0 : index
    %c0_0 = arith.constant 0 : index
    %6 = vector.load %arg1[%c0, %c0_0] : memref<1x128xf32, #tpu.memory_space<vmem>>, vector<1x128xf32>
    %cst = arith.constant 5.000000e-01 : f32
    %7 = vector.broadcast %cst : f32 to vector<1x128xf32>
    %8 = arith.cmpf oge, %6, %7 : vector<1x128xf32>
    %9 = arith.extui %8 : vector<1x128xi1> to vector<1x128xi32>
    %c0_1 = arith.constant 0 : index
    %c0_2 = arith.constant 0 : index
    %10 = vector.load %arg2[%c0_1, %c0_2] : memref<1x128xi32, #tpu.memory_space<vmem>>, vector<1x128xi32>
    %11 = arith.cmpi eq, %9, %10 : vector<1x128xi32>
    %12 = arith.andi %5, %11 : vector<1x128xi1>
    %cst_3 = arith.constant 1.000000e+00 : f32
    %cst_4 = arith.constant 0.000000e+00 : f32
    %13 = vector.broadcast %cst_3 : f32 to vector<1x128xf32>
    %14 = vector.broadcast %cst_4 : f32 to vector<1x128xf32>
    %15 = arith.select %12, %13, %14 : vector<1x128xi1>, vector<1x128xf32>
    %16 = vector.shape_cast %15 : vector<1x128xf32> to vector<1x1x128xf32>
    %cst_5 = arith.constant dense<0.000000e+00> : vector<1xf32>
    %17 = vector.multi_reduction <add>, %16, %cst_5 [1, 2] : vector<1x1x128xf32> to vector<1xf32>
    %18 = vector.shape_cast %17 : vector<1xf32> to vector<1x1x1xf32>
    %19 = vector.extract %18[0, 0, 0] : f32 from vector<1x1x1xf32>
    %c0_i32 = arith.constant 0 : i32
    %20 = arith.cmpi eq, %arg0, %c0_i32 : i32
    %21 = arith.extui %20 : i1 to i32
    %c0_i32_6 = arith.constant 0 : i32
    %22 = arith.cmpi ne, %21, %c0_i32_6 : i32
    scf.if %22 {
      %cst_11 = arith.constant 0.000000e+00 : f32
      %27 = vector.broadcast %cst_11 : f32 to vector<1x1xf32>
      %c0_12 = arith.constant 0 : index
      %c0_13 = arith.constant 0 : index
      %28 = vector.load %arg3[%c0_12, %c0_13] : memref<1x1xf32, #tpu.memory_space<vmem>>, vector<1x1xf32>
      tpu.vector_store %arg3[%c0_12, %c0_13], %27 {strides = array<i32>} : memref<1x1xf32, #tpu.memory_space<vmem>>, vector<1x1xf32>,
    } else {
    }
    %c0_7 = arith.constant 0 : index
    %c0_8 = arith.constant 0 : index
    %23 = vector.load %arg3[%c0_7, %c0_8] : memref<1x1xf32, #tpu.memory_space<vmem>>, vector<1x1xf32>
    %24 = vector.broadcast %19 : f32 to vector<1x1xf32>
    %25 = arith.addf %23, %24 : vector<1x1xf32>
    %c0_9 = arith.constant 0 : index
    %c0_10 = arith.constant 0 : index
    %26 = vector.load %arg3[%c0_9, %c0_10] : memref<1x1xf32, #tpu.memory_space<vmem>>, vector<1x1xf32>
    tpu.vector_store %arg3[%c0_9, %c0_10], %25 {strides = array<i32>} : memref<1x1xf32, #tpu.memory_space<vmem>>, vector<1x1xf32>,
    return
  }
  func.func @transform_0(%arg0: i32) -> (i32, i32) {
    %c0_i32 = arith.constant 0 : i32
    %c0_i32_0 = arith.constant 0 : i32
    return %c0_i32, %arg0 : i32, i32
  }
  func.func @transform_1(%arg0: i32) -> (i32, i32) {
    %c0_i32 = arith.constant 0 : i32
    %c0_i32_0 = arith.constant 0 : i32
    return %c0_i32, %arg0 : i32, i32
  }
  func.func @transform_2(%arg0: i32) -> (i32, i32) {
    %c0_i32 = arith.constant 0 : i32
    %c0_i32_0 = arith.constant 0 : i32
    %c0_i32_1 = arith.constant 0 : i32
    return %c0_i32, %c0_i32_0 : i32, i32
  }
}

</mosaic_0001>

<bundles_post_ra>
// kernel: tpu_custom_call.1
= control target key start
LH: loop header
LB: loop body
LE: loop exit
PB: predicated region body
PF: predicated region fallthrough
CT: control target
= control target key end

     0   :  { %7 = vsyncpa [#allocation3], 0  ;;  %s209_s0 = inlined_call_operand.hbm [shape: f32[1,8], index: 0, kind: input, shape index: {}]   ;;  %s210_s1 = inlined_call_operand.hbm [shape: s32[1,8], index: 1, kind: input, shape index: {}]   ;;  %s211_s2 = inlined_call_operand.hbm [shape: f32[1,1], index: 2, kind: output, shape index: {}]  }
   0x1   :  { %8 = vsyncpa [#allocation6], 0 }
   0x2   :  { %9 = vsyncpa [#allocation4], 0  ;;  %s15_s11 = sshll.u32 %s209_s0, 4  ;;  %s178_s12 = smov [#allocation2]   ;;  %s16_s11 = int_to_ptr.hbm [resolvable:$true] %s15_s11 }
   0x3   :  { %s17_s13 = sshll.u32 %s178_s12, 4  ;;  %s26_s16 = sshll.u32 %s210_s1, 4  ;;  %s18_s13 = int_to_ptr.vmem [resolvable:$true] %s17_s13  ;;  %s27_s16 = int_to_ptr.hbm [resolvable:$true] %s26_s16 }
   0x4   :  { %20 = dma.hbm_to_vmem [thread:$0]  %s16_s11, 16, %s18_s13, [#allocation3]  }
   0x5   :  { %s179_s17 = smov [#allocation5]  }
   0x6   :  { %s28_s18 = sshll.u32 %s179_s17, 4  ;;  %s29_s18 = int_to_ptr.vmem [resolvable:$true] %s28_s18 }
   0x7   :  { %31 = dma.hbm_to_vmem [thread:$0]  %s27_s16, 16, %s29_s18, [#allocation6]  }
   0x8   :  { %172 = dma.done.wait [#allocation3], 16  }
   0x9   :  { %173 = vsyncadd [#allocation3], 4294967280 }
   0xa   :  { %174 = dma.done.wait [#allocation6], 16  }
   0xb   :  { %175 = vsyncadd [#allocation6], 4294967280  ;;  %v40_v0 = vlaneseq  ;;  %vm68_vm0 = vcmask 0   ;;  %v180_v1 = vmov 0.0   ;;  %v46_v3 = vld [vmem:[#allocation2] sm:$0x1] }
   0xc   :  { %69 = vst.msk [vmem:[#allocation7] sm:$0x1] %vm68_vm0, %v180_v1  ;;  %v49_v4 = vld [vmem:[#allocation5] sm:$0x1]  ;;  %vm47_vm2 = vcmp.ge.f32.partialorder %v46_v3, 0.5  ;;  %v181_v5 = vmov 0  }
   0xd   :  { %v41_v2 = vand.u32 127, %v40_v0  ;;  %v48_v6 = vsel %vm47_vm2, 1, %v181_v5  ;;  %vm53_vm4 = vcmask 1040384   ;;  %s182_s0 = smov [#allocation7]   ;;  %s82_s21 = sshll.u32 %s211_s2, 4  ;;  %s83_s21 = int_to_ptr.hbm [resolvable:$true] %s82_s21 }
   0xe   :  { %vm50_vm3 = vcmp.eq.s32.totalorder %v48_v6, %v49_v4  ;;  %s80_s1 = sshll.u32 %s182_s0, 4  ;;  %s81_s1 = int_to_ptr.vmem [resolvable:$true] %s80_s1 }
   0xf   :  { %vm45_vm1 = vcmp.lt.s32.totalorder %v41_v2, 8 }
  0x10   :  { %vm51_vm5 = vmand %vm45_vm1, %vm50_vm3 }
  0x11   :  { %v52_v7 = vsel %vm51_vm5, 1.0, %v180_v1 }
  0x12   :  { %v54_v8 = vsel %vm53_vm4, %v52_v7, 0.0 }
  0x13   :  { %55 = vadd.xlane.f32.xlu0 %v54_v8  ;;  %v70_v16 = vld [vmem:[#allocation7] sm:$0x1] }
  0x86   :  { %v56_v9 = vpop.xlane.xlu0 %55 }
  0x87   :  { %v57_v10 = vrot.slane %v56_v9, 4 }
  0x89   :  { %v58_v11 = vadd.f32 %v57_v10, %v56_v9 }
  0x8b   :  { %v59_v12 = vrot.slane %v58_v11, 2 }
  0x8d   :  { %v60_v13 = vadd.f32 %v59_v12, %v58_v11 }
  0x8f   :  { %v61_v14 = vrot.slane %v60_v13, 1 }
  0x91   :  { %v62_v15 = vadd.f32 %v61_v14, %v60_v13 }
  0x93   :  { %93 = vpush %v62_v15 }
  0xc4   :  { %s94_s22 = spop %93 }
  0xc5   :  { %v71_v17 = vstv %s94_s22 }
  0xc6   :  { %v72_v18 = vadd.f32 %v71_v17, %v70_v16 }
  0xc8   :  { %74 = vst.msk [vmem:[#allocation7] sm:$0x1] %vm68_vm0, %v72_v18 }
  0xc9   :  { %85 = dma.vmem_to_hbm [thread:$0]  %s81_s1, 16, %s83_s21, [#allocation4]  }
  0xca   :  { %176 = dma.done.wait [#allocation4], 16  }
  0xcb   :  { %177 = vsyncadd [#allocation4], 4294967280 }
  0xcc   :  { %90 = vsyncpa [#allocation3], 1 }
  0xcd   :  { %91 = vsyncpa [#allocation6], 1 }
  0xce   :  { %92 = vsyncpa [#allocation4], 1 }

</bundles_post_ra>
